<compile_context>
chip_gen: v7x
topology: tpu7x:2x2x1
jax: 0.10.0
libtpu: 0.0.40
codegen_flags: <defaults>
</compile_context>

<pallas_src>
import functools

import jax
import jax.numpy as jnp
from jax.experimental import pallas as pl
from jax.experimental.pallas import tpu as pltpu


_SELU_ALPHA = 1.6732632423543772
_SELU_SCALE = 1.0507009873554805


def _activate(y, activation):
    # Matches torch: ReLU, LeakyReLU(0.01), SELU, Identity.
    if activation == "relu":
        return jnp.maximum(y, 0)
    if activation == "leaky_relu":
        return jnp.where(y > 0, y, 0.01 * y)
    if activation == "selu":
        return _SELU_SCALE * jnp.where(y > 0, y, _SELU_ALPHA * jnp.expm1(y))
    if activation == "none":
        return y
    raise ValueError(f"unknown activation: {activation}")


def _residual_kernel(x_ref, o_ref, *, activation):
    # Hot path: x + residual (both Identity) then activation — pure VPU, no MXU.
    x = x_ref[...]
    o_ref[...] = _activate(x + x, activation).astype(o_ref.dtype)


def _choose_layout(main, dtype, *, lane_cap=512, max_block_bytes=8 << 20, min_blocks=4):
    """Tile a `main` (multiple-of-128) element slab as (rows, lane) / (tile_rows, lane)."""
    itemsize = jnp.dtype(dtype).itemsize
    pack = {4: 8, 2: 16, 1: 32}.get(itemsize, 8)  # sublane packing per dtype

    # Sublane-first lane search: widen lanes (multiple of 128, <= lane_cap) only if
    # enough rows remain to fill the sublane pack AND keep >= min_blocks grid steps.
    lane = 128
    cand = min(lane_cap, main)
    cand -= cand % 128
    while cand > 128:
        if main % cand == 0 and (main // cand) >= pack * min_blocks:
            lane = cand
            break
        cand -= 128
    rows = main // lane

    if rows <= pack:
        # Tiny (only reachable when the caller forces the Pallas path): one block
        # covering the whole array (block dim == full array dim is always legal).
        return rows, lane, rows

    # Row tile: multiple of the sublane pack, capped so one block <= max_block_bytes,
    # and small enough that the grid keeps >= min_blocks steps when splittable
    # (lets both v7x TensorCores stream under dimension_semantics='parallel').
    tile_rows = max(pack, (max_block_bytes // (lane * itemsize)) // pack * pack)
    if rows >= pack * min_blocks:
        tile_rows = min(tile_rows, max(pack, (rows // min_blocks) // pack * pack))
    tile_rows = min(tile_rows, rows)
    if tile_rows != rows:
        tile_rows -= tile_rows % pack  # stays >= pack; ragged last block is masked
    return rows, lane, tile_rows


@functools.partial(jax.jit, static_argnames=("tile_rows", "activation"), donate_argnums=(0,))
def _residual_pallas_2d(x2d, *, tile_rows, activation):
    rows, lane = x2d.shape
    grid = (pl.cdiv(rows, tile_rows),)
    return pl.pallas_call(
        functools.partial(_residual_kernel, activation=activation),
        out_shape=jax.ShapeDtypeStruct((rows, lane), x2d.dtype),
        grid=grid,
        in_specs=[pl.BlockSpec((tile_rows, lane), lambda i: (i, 0))],
        out_specs=pl.BlockSpec((tile_rows, lane), lambda i: (i, 0)),
        # Output reuses the (donated) input slab: halves VMEM buffering and skips a
        # separate HBM output allocation.
        input_output_aliases={0: 0},
        compiler_params=pltpu.CompilerParams(
            dimension_semantics=("parallel",),
            # Explicit ceiling: above scoped defaults (16 MiB v5e / 32 MiB v6e+),
            # safely under every generation's physical VMEM (64 MiB/TC on v7x).
            vmem_limit_bytes=48 << 20,
        ),
    )(x2d)


def residual_block_forward(x, in_channels=None, out_channels=None, activation="relu",
                           *, min_pallas_bytes=256 * 1024):
    """Pallas implementation of ResidualBlock.forward.

    `blocks` and `shortcut` are both nn.Identity in the reference module, so regardless
    of should_apply_shortcut the forward pass is activate(x + x).
    """
    del in_channels, out_channels  # Identity blocks/shortcut: result is channel-agnostic.
    total = x.size
    itemsize = jnp.dtype(x.dtype).itemsize

    # Tiny inputs: custom-call + pipeline-prologue overhead dominates; let XLA fuse
    # the two VPU ops into neighbouring computation instead.
    if total * itemsize < min_pallas_bytes or total < 128:
        return _activate(x + x, activation)

    flat = x.reshape(-1)
    main = (total // 128) * 128        # lane-aligned slab handled by the kernel
    tail = total - main                # <= 127 ragged elements handled in jnp

    rows, lane, tile_rows = _choose_layout(main, x.dtype)
    x2d = (flat[:main] if tail else flat).reshape(rows, lane)

    out = _residual_pallas_2d(x2d, tile_rows=tile_rows, activation=activation).reshape(-1)
    if tail:
        # TODO(synk): for huge ragged totals this concatenate still costs one output
        # copy; fold the tail into a masked final block if that ever matters.
        out = jnp.concatenate([out, _activate(flat[main:] + flat[main:], activation)])
    return out.reshape(x.shape)


if __name__ == "__main__":
    key = jax.random.PRNGKey(0)
    k1, k2, k3 = jax.random.split(key, 3)

    def reference(x, activation="relu"):
        return _activate(x + x, activation)

    # 1) Module-sized input (N,C,H,W) = (2,4,16,16), forced through the Pallas path so
    #    the kernel itself is exercised (the default wrapper would short-circuit it).
    x1 = jax.random.normal(k1, (2, 4, 16, 16), dtype=jnp.float32)
    o1 = jax.block_until_ready(
        residual_block_forward(x1, 4, 4, "relu", min_pallas_bytes=0))
    assert o1.shape == x1.shape and o1.dtype == x1.dtype
    assert jnp.allclose(o1, reference(x1), atol=1e-6), "mismatch vs reference (small)"

    # 2) Larger input on the default path: multi-block 'parallel' grid + in/out aliasing.
    x2 = jax.random.normal(k2, (8, 16, 32, 32), dtype=jnp.float32)  # 512 KiB
    o2 = jax.block_until_ready(residual_block_forward(x2, 16, 16, "relu"))
    assert jnp.allclose(o2, reference(x2), atol=1e-6), "mismatch vs reference (large)"

    # 3) Ragged element count (not a multiple of 128): kernel slab + jnp tail epilogue.
    x3 = jax.random.normal(k3, (3, 5, 7, 11), dtype=jnp.float32)
    o3 = jax.block_until_ready(
        residual_block_forward(x3, 5, 5, "relu", min_pallas_bytes=0))
    assert jnp.allclose(o3, reference(x3), atol=1e-6), "mismatch vs reference (ragged)"

    print("KERNEL_OK")
</pallas_src>

<mosaic_0001>
module attributes {stable_mosaic.version = 11 : i64} {
  func.func @_residual_kernel(%arg0: i32, %arg1: memref<16x128xf32, #tpu.memory_space<vmem>>, %arg2: memref<16x128xf32, #tpu.memory_space<vmem>>) attributes {dimension_semantics = [#tpu.dimension_semantics<parallel>], iteration_bounds = array<i64: 1>, scalar_prefetch = 0 : i64, scratch_operands = 0 : i64, tpu.core_type = #tpu.core_type<tc>, window_params = [{transform_indices = @transform_0, window_bounds = array<i64: 16, 128>}, {transform_indices = @transform_1, window_bounds = array<i64: 16, 128>}]} {
    %c0 = arith.constant 0 : index
    %c0_0 = arith.constant 0 : index
    %0 = vector.load %arg1[%c0, %c0_0] : memref<16x128xf32, #tpu.memory_space<vmem>>, vector<16x128xf32>
    %1 = arith.addf %0, %0 : vector<16x128xf32>
    %cst = arith.constant 0.000000e+00 : f32
    %2 = vector.broadcast %cst : f32 to vector<16x128xf32>
    %3 = arith.maximumf %1, %2 : vector<16x128xf32>
    %c0_1 = arith.constant 0 : index
    %c0_2 = arith.constant 0 : index
    %4 = vector.load %arg2[%c0_1, %c0_2] : memref<16x128xf32, #tpu.memory_space<vmem>>, vector<16x128xf32>
    tpu.vector_store %arg2[%c0_1, %c0_2], %3 {strides = array<i32>} : memref<16x128xf32, #tpu.memory_space<vmem>>, vector<16x128xf32>,
    return
  }
  func.func @transform_0(%arg0: i32) -> (i32, i32) {
    %c0_i32 = arith.constant 0 : i32
    %c0_i32_0 = arith.constant 0 : i32
    return %arg0, %c0_i32 : i32, i32
  }
  func.func @transform_1(%arg0: i32) -> (i32, i32) {
    %c0_i32 = arith.constant 0 : i32
    %c0_i32_0 = arith.constant 0 : i32
    return %arg0, %c0_i32 : i32, i32
  }
}

</mosaic_0001>

<bundles_post_ra>
// kernel: _residual_pallas_2d.1
= control target key start
LH: loop header
LB: loop body
LE: loop exit
PB: predicated region body
PF: predicated region fallthrough
CT: control target
= control target key end

     0   :  { %6 = vsyncpa [#allocation3], 0  ;;  %s144_s0 = inlined_call_operand.hbm [shape: f32[16,128], index: 0, kind: input, shape index: {}, may-alias: {0,1}]   ;;  %s145_s1 = inlined_call_operand.hbm [shape: f32[16,128], index: 1, kind: output, shape index: {}, may-alias: {0,1}]  }
   0x1   :  { %7 = vsyncpa [#allocation4], 0  ;;  %s100_s6 = smov [#allocation2]   ;;  %s52_s10 = scalar_lea.hbm %s144_s0, 256 }
   0x2   :  { %s13_s7 = sshll.u32 %s100_s6, 4  ;;  %p53_p0 = scmp.ne.s32.totalorder %s144_s0, %s52_s10  ;;  %s14_s7 = int_to_ptr.vmem [resolvable:$true] %s13_s7 }
   0x3   :  { %p56_p1 = scmp.lt.u32.totalorder %s52_s10, %s144_s0 }
   0x5   :  { %p58_p2 = pnand %p56_p1, %p53_p0 }
   0x7   :  { %61 = shalt.err (!%p58_p2)
}
   0x8   :  { %s62_s15 = scalar_lea.vmem %s14_s7, 256  ;;  %p67_p4 = scmp.lt.s32.totalorder %s14_s7, %s14_s7 }
   0x9   :  { %p63_p3 = scmp.ne.s32.totalorder %s14_s7, %s62_s15  ;;  %p68_p5 = scmp.lt.s32.totalorder %s62_s15, %s62_s15 }
   0xb   :  { %p69_p6 = por %p68_p5, %p67_p4 }
   0xd   :  { %p70_p7 = pnand %p69_p6, %p63_p3 }
   0xf   :  { %73 = shalt.err (!%p70_p7)
}
  0x10   :  { %s101_s16 = smov 128   ;;  %s102_s17 = smov 8  }
  0x11   :  { %19 = dma.hbm_to_vmem [thread:$0]  %s144_s0, 256, %s14_s7, [#allocation3], %s101_s16, %s101_s16, %s102_s17  }
  0x12   :  { %96 = dma.done.wait [#allocation3], 256  }
  0x13   :  { %97 = vsyncadd [#allocation3], 4294967040  ;;  %v23_v0 = vld [vmem:[#allocation2] sm:$0xff]  ;;  %v24_v1 = vld [vmem:[#allocation2 + $0x8] sm:$0xff]  ;;  %s103_s20 = smov [#allocation5]  }
  0x14   :  { %s36_s21 = sshll.u32 %s103_s20, 4  ;;  %v25_v2 = vadd.f32 %v23_v0, %v23_v0  ;;  %v26_v3 = vadd.f32 %v24_v1, %v24_v1  ;;  %s37_s21 = int_to_ptr.vmem [resolvable:$true] %s36_s21 }
  0x15   :  { %s74_s22 = scalar_lea.vmem %s37_s21, 256  ;;  %p79_p9 = scmp.lt.s32.totalorder %s37_s21, %s37_s21 }
  0x16   :  { %v27_v4 = vmax.f32 %v25_v2, 0.0  ;;  %v28_v5 = vmax.f32 %v26_v3, 0.0  ;;  %p75_p8 = scmp.ne.s32.totalorder %s37_s21, %s74_s22  ;;  %p80_p10 = scmp.lt.s32.totalorder %s74_s22, %s74_s22 }
  0x18   :  { %29 = vst [vmem:[#allocation5] sm:$0xff] %v27_v4  ;;  %30 = vst [vmem:[#allocation5 + $0x8] sm:$0xff] %v28_v5  ;;  %p81_p11 = por %p80_p10, %p79_p9 }
  0x1a   :  { %p82_p12 = pnand %p81_p11, %p75_p8 }
  0x1c   :  { %85 = shalt.err (!%p82_p12)
}
  0x1d   :  { %s86_s24 = scalar_lea.hbm %s145_s1, 256 }
  0x1e   :  { %p87_p13 = scmp.ne.s32.totalorder %s145_s1, %s86_s24  ;;  %p90_p0 = scmp.lt.u32.totalorder %s86_s24, %s145_s1 }
  0x20   :  { %p92_p1 = pnand %p90_p0, %p87_p13 }
  0x22   :  { %95 = shalt.err (!%p92_p1)
}
  0x23   :  { %42 = dma.vmem_to_hbm [thread:$0]  %s37_s21, 256, %s145_s1, [#allocation4], %s101_s16, %s101_s16, %s102_s17  }
  0x24   :  { %98 = dma.done.wait [#allocation4], 256  }
  0x25   :  { %99 = vsyncadd [#allocation4], 4294967040 }
  0x26   :  { %46 = vsyncpa [#allocation3], 1 }
  0x27   :  { %47 = vsyncpa [#allocation4], 1 }

</bundles_post_ra>
